<compile_context>
chip_gen: v7x
topology: tpu7x:2x2x1
jax: 0.10.0
libtpu: 0.0.40
codegen_flags: <defaults>
</compile_context>

<pallas_src>
import functools

import jax
import jax.numpy as jnp
from jax import lax
from jax.experimental import pallas as pl
from jax.experimental.pallas import tpu as pltpu


def gru_kernel(t_steps, x_ref, wih_ref, whh_ref, bi_ref, bhn_ref, out_ref):
    """Single-shot GRU: fused hoisted input projection + unrolled recurrence.

    t_steps : static Python int, number of real time steps (<= T_pad)
    x_ref   : (B, T_pad, D)  batch_first input, T_pad % 8 == 0 (wrapper pads)
    wih_ref : (D, 3H)        input weights, (in, out) layout, gate cols [r|z|n]
    whh_ref : (H, 3H)        hidden weights, (in, out) layout, gate cols [r|z|n]
    bi_ref  : (1, 3H)        [b_ir+b_hr | b_iz+b_hz | b_in]
    bhn_ref : (1, H)         b_hn (kept separate: it sits inside r * (...))
    out_ref : (B, H)         final hidden state (written once)
    """
    B, T_pad, D = x_ref.shape
    H = out_ref.shape[1]
    G = 3 * H

    # ---- fused hoisted input projection: one (B*T_pad, D) @ (D, 3H) matmul --
    # The reshape is a zero-copy layout collapse because T_pad % 8 == 0.
    x_flat = x_ref[...].reshape(B * T_pad, D)
    gi = (
        jnp.dot(x_flat, wih_ref[...], preferred_element_type=jnp.float32)
        + bi_ref[...]
    ).reshape(B, T_pad, G)

    whh = whh_ref[...]                                     # (H, 3H)
    b_hn = jnp.broadcast_to(bhn_ref[...], (B, H))          # hoisted broadcast

    # ---- peeled t = 0 step: h0 == 0 => no hidden-side matmul at all ---------
    g0 = gi[:, 0, :]
    r = jax.nn.sigmoid(g0[:, 0:H])
    z = jax.nn.sigmoid(g0[:, H:2 * H])
    n = jnp.tanh(g0[:, 2 * H:3 * H] + r * b_hn)
    h = (1.0 - z) * n

    # ---- remaining serial recurrence, fully unrolled (t_steps is static) ----
    # Exactly one small fused matmul per step stays on the dependency chain.
    for t in range(1, t_steps):
        gh = jnp.dot(h, whh, preferred_element_type=jnp.float32)   # (B, 3H)
        gt = gi[:, t, :]
        r = jax.nn.sigmoid(gt[:, 0:H] + gh[:, 0:H])
        z = jax.nn.sigmoid(gt[:, H:2 * H] + gh[:, H:2 * H])
        n = jnp.tanh(gt[:, 2 * H:3 * H] + r * (gh[:, 2 * H:3 * H] + b_hn))
        h = (1.0 - z) * n + z * h

    # Single store at the very end.
    out_ref[...] = h


def question_embedding_forward(x_btd, w_ih, w_hh, b_ih, b_hh):
    """GRU forward returning output[:, -1] == final hidden state.

    x_btd : (B, T, D)   float32, batch_first (as in the PyTorch module)
    w_ih  : (3H, D)     PyTorch weight_ih_l0   (gate order r, z, n)
    w_hh  : (3H, H)     PyTorch weight_hh_l0
    b_ih  : (3H,)       PyTorch bias_ih_l0
    b_hh  : (3H,)       PyTorch bias_hh_l0
    returns (B, H) float32
    """
    B, T, D = x_btd.shape
    H = w_hh.shape[1]
    G = 3 * H

    x_f32 = x_btd.astype(jnp.float32)

    # Pad T to a multiple of 8 so the in-kernel (B,T,D)->(B*T,D) reshape never
    # crosses an (8,128) tile boundary. Padded steps are never consumed by the
    # recurrence (the kernel loop runs only the real T steps), so correctness
    # is unaffected; only a few wasted prologue flops.
    T_pad = ((T + 7) // 8) * 8
    if T_pad != T:
        x_f32 = jnp.pad(x_f32, ((0, 0), (0, T_pad - T), (0, 0)))

    # Pre-transpose to (in, out) layout in the wrapper (off the kernel's
    # latency-critical path) -> plain (M,K)@(K,N) dots inside the kernel.
    # Gate columns stay in PyTorch order [r | z | n].
    wih_t = w_ih.astype(jnp.float32).T        # (D, 3H)
    whh_t = w_hh.astype(jnp.float32).T        # (H, 3H)

    # Fold b_hr / b_hz into the input-side biases; b_hn must stay separate.
    b_i = b_ih.astype(jnp.float32)
    b_h = b_hh.astype(jnp.float32)
    bi_fold = jnp.concatenate(
        [b_i[0:H] + b_h[0:H], b_i[H:2 * H] + b_h[H:2 * H], b_i[2 * H:3 * H]]
    ).reshape(1, G)
    b_hn = b_h[2 * H:3 * H].reshape(1, H)

    kernel = functools.partial(gru_kernel, T)

    # Total resident data is only a few tens of KiB -> whole arrays as single
    # VMEM blocks, single grid step, no extra buffering or vmem_limit tweaks.
    return pl.pallas_call(
        kernel,
        out_shape=jax.ShapeDtypeStruct((B, H), jnp.float32),
        grid=(1,),
        in_specs=[
            pl.BlockSpec((B, T_pad, D), lambda i: (0, 0, 0)),  # x (batch_first)
            pl.BlockSpec((D, G), lambda i: (0, 0)),            # W_ih.T fused
            pl.BlockSpec((H, G), lambda i: (0, 0)),            # W_hh.T fused
            pl.BlockSpec((1, G), lambda i: (0, 0)),            # folded biases
            pl.BlockSpec((1, H), lambda i: (0, 0)),            # b_hn
        ],
        out_specs=pl.BlockSpec((B, H), lambda i: (0, 0)),
        compiler_params=pltpu.CompilerParams(
            dimension_semantics=("arbitrary",),
        ),
    )(x_f32, wih_t, whh_t, bi_fold, b_hn)


def gru_reference(x_btd, w_ih, w_hh, b_ih, b_hh):
    """Pure-JAX reference (lax.scan) mirroring torch.nn.GRU, batch_first."""
    H = w_hh.shape[1]

    def step(h, x_t):
        gi = x_t @ w_ih.T + b_ih
        gh = h @ w_hh.T + b_hh
        r = jax.nn.sigmoid(gi[:, 0:H] + gh[:, 0:H])
        z = jax.nn.sigmoid(gi[:, H:2 * H] + gh[:, H:2 * H])
        n = jnp.tanh(gi[:, 2 * H:3 * H] + r * gh[:, 2 * H:3 * H])
        h_new = (1.0 - z) * n + z * h
        return h_new, h_new

    B = x_btd.shape[0]
    h0 = jnp.zeros((B, H), jnp.float32)
    x_tbd = jnp.transpose(x_btd, (1, 0, 2))
    h_last, _ = lax.scan(step, h0, x_tbd)
    return h_last


if __name__ == "__main__":
    # Module config: in_dim=32, num_hid=32, nlayers=1, bidirect=False, GRU.
    B, T, D, H = 2, 8, 32, 32

    key = jax.random.PRNGKey(0)
    kx, k1, k2, k3, k4 = jax.random.split(key, 5)

    # Deterministic parameter init matching PyTorch's U(-1/sqrt(H), 1/sqrt(H)).
    bound = 1.0 / jnp.sqrt(jnp.float32(H))
    w_ih = jax.random.uniform(k1, (3 * H, D), jnp.float32, -bound, bound)
    w_hh = jax.random.uniform(k2, (3 * H, H), jnp.float32, -bound, bound)
    b_ih = jax.random.uniform(k3, (3 * H,), jnp.float32, -bound, bound)
    b_hh = jax.random.uniform(k4, (3 * H,), jnp.float32, -bound, bound)

    x = jax.random.normal(kx, (B, T, D), jnp.float32)

    out = question_embedding_forward(x, w_ih, w_hh, b_ih, b_hh)
    out = jax.block_until_ready(out)

    ref = jax.block_until_ready(gru_reference(x, w_ih, w_hh, b_ih, b_hh))
    assert out.shape == (B, H)
    assert jnp.allclose(out, ref, atol=1e-5, rtol=1e-5), (
        f"max abs err {jnp.max(jnp.abs(out - ref))}"
    )

    print("KERNEL_OK")
</pallas_src>

<mosaic_0001>
module attributes {stable_mosaic.version = 11 : i64} {
  func.func @gru_kernel(%arg0: i32, %arg1: memref<2x8x32xf32, #tpu.memory_space<vmem>>, %arg2: memref<32x96xf32, #tpu.memory_space<vmem>>, %arg3: memref<32x96xf32, #tpu.memory_space<vmem>>, %arg4: memref<1x96xf32, #tpu.memory_space<vmem>>, %arg5: memref<1x32xf32, #tpu.memory_space<vmem>>, %arg6: memref<2x32xf32, #tpu.memory_space<vmem>>) attributes {dimension_semantics = [#tpu.dimension_semantics<arbitrary>], iteration_bounds = array<i64: 1>, scalar_prefetch = 0 : i64, scratch_operands = 0 : i64, tpu.core_type = #tpu.core_type<tc>, window_params = [{pipeline_mode = #tpu.pipeline_mode<synchronous>, transform_indices = @transform_0, window_bounds = array<i64: 2, 8, 32>}, {pipeline_mode = #tpu.pipeline_mode<synchronous>, transform_indices = @transform_1, window_bounds = array<i64: 32, 96>}, {pipeline_mode = #tpu.pipeline_mode<synchronous>, transform_indices = @transform_2, window_bounds = array<i64: 32, 96>}, {pipeline_mode = #tpu.pipeline_mode<synchronous>, transform_indices = @transform_3, window_bounds = array<i64: 1, 96>}, {pipeline_mode = #tpu.pipeline_mode<synchronous>, transform_indices = @transform_4, window_bounds = array<i64: 1, 32>}, {pipeline_mode = #tpu.pipeline_mode<synchronous>, transform_indices = @transform_5, window_bounds = array<i64: 2, 32>}]} {
    %c0 = arith.constant 0 : index
    %c0_0 = arith.constant 0 : index
    %c0_1 = arith.constant 0 : index
    %0 = vector.load %arg1[%c0, %c0_0, %c0_1] : memref<2x8x32xf32, #tpu.memory_space<vmem>>, vector<2x8x32xf32>
    %1 = vector.shape_cast %0 : vector<2x8x32xf32> to vector<16x32xf32>
    %c0_2 = arith.constant 0 : index
    %c0_3 = arith.constant 0 : index
    %2 = vector.load %arg2[%c0_2, %c0_3] : memref<32x96xf32, #tpu.memory_space<vmem>>, vector<32x96xf32>
    %cst = arith.constant dense<0.000000e+00> : vector<16x96xf32>
    %3 = tpu.matmul %1, %2, %cst {dimension_numbers = #tpu.dot_dimension_numbers<[1], [0], [0], [1], [0, 0, 1, 1], [], []>} : vector<16x32xf32>, vector<32x96xf32>, vector<16x96xf32> -> vector<16x96xf32>
    %c0_4 = arith.constant 0 : index
    %c0_5 = arith.constant 0 : index
    %4 = vector.load %arg4[%c0_4, %c0_5] : memref<1x96xf32, #tpu.memory_space<vmem>>, vector<1x96xf32>
    %5 = vector.broadcast %4 : vector<1x96xf32> to vector<16x96xf32>
    %6 = arith.addf %3, %5 : vector<16x96xf32>
    %7 = vector.shape_cast %6 : vector<16x96xf32> to vector<2x8x96xf32>
    %c0_6 = arith.constant 0 : index
    %c0_7 = arith.constant 0 : index
    %8 = vector.load %arg3[%c0_6, %c0_7] : memref<32x96xf32, #tpu.memory_space<vmem>>, vector<32x96xf32>
    %c0_8 = arith.constant 0 : index
    %c0_9 = arith.constant 0 : index
    %9 = vector.load %arg5[%c0_8, %c0_9] : memref<1x32xf32, #tpu.memory_space<vmem>>, vector<1x32xf32>
    %10 = vector.shape_cast %9 : vector<1x32xf32> to vector<1x32xf32>
    %11 = vector.broadcast %10 : vector<1x32xf32> to vector<2x32xf32>
    %12 = vector.extract_strided_slice %7 {offsets = [0, 0, 0], sizes = [2, 1, 96], strides = [1, 1, 1]} : vector<2x8x96xf32> to vector<2x1x96xf32>
    %13 = vector.shape_cast %12 : vector<2x1x96xf32> to vector<2x96xf32>
    %14 = vector.extract_strided_slice %13 {offsets = [0, 0], sizes = [2, 32], strides = [1, 1]} : vector<2x96xf32> to vector<2x32xf32>
    %15 = arith.negf %14 : vector<2x32xf32>
    %16 = math.exp %15 : vector<2x32xf32>
    %cst_10 = arith.constant 1.000000e+00 : f32
    %17 = vector.broadcast %cst_10 : f32 to vector<2x32xf32>
    %18 = arith.addf %17, %16 : vector<2x32xf32>
    %19 = arith.divf %17, %18 : vector<2x32xf32>
    %20 = vector.extract_strided_slice %13 {offsets = [0, 32], sizes = [2, 32], strides = [1, 1]} : vector<2x96xf32> to vector<2x32xf32>
    %21 = arith.negf %20 : vector<2x32xf32>
    %22 = math.exp %21 : vector<2x32xf32>
    %cst_11 = arith.constant 1.000000e+00 : f32
    %23 = vector.broadcast %cst_11 : f32 to vector<2x32xf32>
    %24 = arith.addf %23, %22 : vector<2x32xf32>
    %25 = arith.divf %23, %24 : vector<2x32xf32>
    %26 = vector.extract_strided_slice %13 {offsets = [0, 64], sizes = [2, 32], strides = [1, 1]} : vector<2x96xf32> to vector<2x32xf32>
    %27 = arith.mulf %19, %11 : vector<2x32xf32>
    %28 = arith.addf %26, %27 : vector<2x32xf32>
    %29 = math.tanh %28 : vector<2x32xf32>
    %cst_12 = arith.constant 1.000000e+00 : f32
    %30 = vector.broadcast %cst_12 : f32 to vector<2x32xf32>
    %31 = arith.subf %30, %25 : vector<2x32xf32>
    %32 = arith.mulf %31, %29 : vector<2x32xf32>
    %cst_13 = arith.constant dense<0.000000e+00> : vector<2x96xf32>
    %33 = tpu.matmul %32, %8, %cst_13 {dimension_numbers = #tpu.dot_dimension_numbers<[1], [0], [0], [1], [0, 0, 1, 1], [], []>} : vector<2x32xf32>, vector<32x96xf32>, vector<2x96xf32> -> vector<2x96xf32>
    %34 = vector.extract_strided_slice %7 {offsets = [0, 1, 0], sizes = [2, 1, 96], strides = [1, 1, 1]} : vector<2x8x96xf32> to vector<2x1x96xf32>
    %35 = vector.shape_cast %34 : vector<2x1x96xf32> to vector<2x96xf32>
    %36 = vector.extract_strided_slice %35 {offsets = [0, 0], sizes = [2, 32], strides = [1, 1]} : vector<2x96xf32> to vector<2x32xf32>
    %37 = vector.extract_strided_slice %33 {offsets = [0, 0], sizes = [2, 32], strides = [1, 1]} : vector<2x96xf32> to vector<2x32xf32>
    %38 = arith.addf %36, %37 : vector<2x32xf32>
    %39 = arith.negf %38 : vector<2x32xf32>
    %40 = math.exp %39 : vector<2x32xf32>
    %cst_14 = arith.constant 1.000000e+00 : f32
    %41 = vector.broadcast %cst_14 : f32 to vector<2x32xf32>
    %42 = arith.addf %41, %40 : vector<2x32xf32>
    %43 = arith.divf %41, %42 : vector<2x32xf32>
    %44 = vector.extract_strided_slice %35 {offsets = [0, 32], sizes = [2, 32], strides = [1, 1]} : vector<2x96xf32> to vector<2x32xf32>
    %45 = vector.extract_strided_slice %33 {offsets = [0, 32], sizes = [2, 32], strides = [1, 1]} : vector<2x96xf32> to vector<2x32xf32>
    %46 = arith.addf %44, %45 : vector<2x32xf32>
    %47 = arith.negf %46 : vector<2x32xf32>
    %48 = math.exp %47 : vector<2x32xf32>
    %cst_15 = arith.constant 1.000000e+00 : f32
    %49 = vector.broadcast %cst_15 : f32 to vector<2x32xf32>
    %50 = arith.addf %49, %48 : vector<2x32xf32>
    %51 = arith.divf %49, %50 : vector<2x32xf32>
    %52 = vector.extract_strided_slice %35 {offsets = [0, 64], sizes = [2, 32], strides = [1, 1]} : vector<2x96xf32> to vector<2x32xf32>
    %53 = vector.extract_strided_slice %33 {offsets = [0, 64], sizes = [2, 32], strides = [1, 1]} : vector<2x96xf32> to vector<2x32xf32>
    %54 = arith.addf %53, %11 : vector<2x32xf32>
    %55 = arith.mulf %43, %54 : vector<2x32xf32>
    %56 = arith.addf %52, %55 : vector<2x32xf32>
    %57 = math.tanh %56 : vector<2x32xf32>
    %cst_16 = arith.constant 1.000000e+00 : f32
    %58 = vector.broadcast %cst_16 : f32 to vector<2x32xf32>
    %59 = arith.subf %58, %51 : vector<2x32xf32>
    %60 = arith.mulf %59, %57 : vector<2x32xf32>
    %61 = arith.mulf %51, %32 : vector<2x32xf32>
    %62 = arith.addf %60, %61 : vector<2x32xf32>
    %cst_17 = arith.constant dense<0.000000e+00> : vector<2x96xf32>
    %63 = tpu.matmul %62, %8, %cst_17 {dimension_numbers = #tpu.dot_dimension_numbers<[1], [0], [0], [1], [0, 0, 1, 1], [], []>} : vector<2x32xf32>, vector<32x96xf32>, vector<2x96xf32> -> vector<2x96xf32>
    %64 = vector.extract_strided_slice %7 {offsets = [0, 2, 0], sizes = [2, 1, 96], strides = [1, 1, 1]} : vector<2x8x96xf32> to vector<2x1x96xf32>
    %65 = vector.shape_cast %64 : vector<2x1x96xf32> to vector<2x96xf32>
    %66 = vector.extract_strided_slice %65 {offsets = [0, 0], sizes = [2, 32], strides = [1, 1]} : vector<2x96xf32> to vector<2x32xf32>
    %67 = vector.extract_strided_slice %63 {offsets = [0, 0], sizes = [2, 32], strides = [1, 1]} : vector<2x96xf32> to vector<2x32xf32>
    %68 = arith.addf %66, %67 : vector<2x32xf32>
    %69 = arith.negf %68 : vector<2x32xf32>
    %70 = math.exp %69 : vector<2x32xf32>
    %cst_18 = arith.constant 1.000000e+00 : f32
    %71 = vector.broadcast %cst_18 : f32 to vector<2x32xf32>
    %72 = arith.addf %71, %70 : vector<2x32xf32>
    %73 = arith.divf %71, %72 : vector<2x32xf32>
    %74 = vector.extract_strided_slice %65 {offsets = [0, 32], sizes = [2, 32], strides = [1, 1]} : vector<2x96xf32> to vector<2x32xf32>
    %75 = vector.extract_strided_slice %63 {offsets = [0, 32], sizes = [2, 32], strides = [1, 1]} : vector<2x96xf32> to vector<2x32xf32>
    %76 = arith.addf %74, %75 : vector<2x32xf32>
    %77 = arith.negf %76 : vector<2x32xf32>
    %78 = math.exp %77 : vector<2x32xf32>
    %cst_19 = arith.constant 1.000000e+00 : f32
    %79 = vector.broadcast %cst_19 : f32 to vector<2x32xf32>
    %80 = arith.addf %79, %78 : vector<2x32xf32>
    %81 = arith.divf %79, %80 : vector<2x32xf32>
    %82 = vector.extract_strided_slice %65 {offsets = [0, 64], sizes = [2, 32], strides = [1, 1]} : vector<2x96xf32> to vector<2x32xf32>
    %83 = vector.extract_strided_slice %63 {offsets = [0, 64], sizes = [2, 32], strides = [1, 1]} : vector<2x96xf32> to vector<2x32xf32>
    %84 = arith.addf %83, %11 : vector<2x32xf32>
    %85 = arith.mulf %73, %84 : vector<2x32xf32>
    %86 = arith.addf %82, %85 : vector<2x32xf32>
    %87 = math.tanh %86 : vector<2x32xf32>
    %cst_20 = arith.constant 1.000000e+00 : f32
    %88 = vector.broadcast %cst_20 : f32 to vector<2x32xf32>
    %89 = arith.subf %88, %81 : vector<2x32xf32>
    %90 = arith.mulf %89, %87 : vector<2x32xf32>
    %91 = arith.mulf %81, %62 : vector<2x32xf32>
    %92 = arith.addf %90, %91 : vector<2x32xf32>
    %cst_21 = arith.constant dense<0.000000e+00> : vector<2x96xf32>
    %93 = tpu.matmul %92, %8, %cst_21 {dimension_numbers = #tpu.dot_dimension_numbers<[1], [0], [0], [1], [0, 0, 1, 1], [], []>} : vector<2x32xf32>, vector<32x96xf32>, vector<2x96xf32> -> vector<2x96xf32>
    %94 = vector.extract_strided_slice %7 {offsets = [0, 3, 0], sizes = [2, 1, 96], strides = [1, 1, 1]} : vector<2x8x96xf32> to vector<2x1x96xf32>
    %95 = vector.shape_cast %94 : vector<2x1x96xf32> to vector<2x96xf32>
    %96 = vector.extract_strided_slice %95 {offsets = [0, 0], sizes = [2, 32], strides = [1, 1]} : vector<2x96xf32> to vector<2x32xf32>
    %97 = vector.extract_strided_slice %93 {offsets = [0, 0], sizes = [2, 32], strides = [1, 1]} : vector<2x96xf32> to vector<2x32xf32>
    %98 = arith.addf %96, %97 : vector<2x32xf32>
    %99 = arith.negf %98 : vector<2x32xf32>
    %100 = math.exp %99 : vector<2x32xf32>
    %cst_22 = arith.constant 1.000000e+00 : f32
    %101 = vector.broadcast %cst_22 : f32 to vector<2x32xf32>
    %102 = arith.addf %101, %100 : vector<2x32xf32>
    %103 = arith.divf %101, %102 : vector<2x32xf32>
    %104 = vector.extract_strided_slice %95 {offsets = [0, 32], sizes = [2, 32], strides = [1, 1]} : vector<2x96xf32> to vector<2x32xf32>
    %105 = vector.extract_strided_slice %93 {offsets = [0, 32], sizes = [2, 32], strides = [1, 1]} : vector<2x96xf32> to vector<2x32xf32>
    %106 = arith.addf %104, %105 : vector<2x32xf32>
    %107 = arith.negf %106 : vector<2x32xf32>
    %108 = math.exp %107 : vector<2x32xf32>
    %cst_23 = arith.constant 1.000000e+00 : f32
    %109 = vector.broadcast %cst_23 : f32 to vector<2x32xf32>
    %110 = arith.addf %109, %108 : vector<2x32xf32>
    %111 = arith.divf %109, %110 : vector<2x32xf32>
    %112 = vector.extract_strided_slice %95 {offsets = [0, 64], sizes = [2, 32], strides = [1, 1]} : vector<2x96xf32> to vector<2x32xf32>
    %113 = vector.extract_strided_slice %93 {offsets = [0, 64], sizes = [2, 32], strides = [1, 1]} : vector<2x96xf32> to vector<2x32xf32>
    %114 = arith.addf %113, %11 : vector<2x32xf32>
    %115 = arith.mulf %103, %114 : vector<2x32xf32>
    %116 = arith.addf %112, %115 : vector<2x32xf32>
    %117 = math.tanh %116 : vector<2x32xf32>
    %cst_24 = arith.constant 1.000000e+00 : f32
    %118 = vector.broadcast %cst_24 : f32 to vector<2x32xf32>
    %119 = arith.subf %118, %111 : vector<2x32xf32>
    %120 = arith.mulf %119, %117 : vector<2x32xf32>
    %121 = arith.mulf %111, %92 : vector<2x32xf32>
    %122 = arith.addf %120, %121 : vector<2x32xf32>
    %cst_25 = arith.constant dense<0.000000e+00> : vector<2x96xf32>
    %123 = tpu.matmul %122, %8, %cst_25 {dimension_numbers = #tpu.dot_dimension_numbers<[1], [0], [0], [1], [0, 0, 1, 1], [], []>} : vector<2x32xf32>, vector<32x96xf32>, vector<2x96xf32> -> vector<2x96xf32>
    %124 = vector.extract_strided_slice %7 {offsets = [0, 4, 0], sizes = [2, 1, 96], strides = [1, 1, 1]} : vector<2x8x96xf32> to vector<2x1x96xf32>
    %125 = vector.shape_cast %124 : vector<2x1x96xf32> to vector<2x96xf32>
    %126 = vector.extract_strided_slice %125 {offsets = [0, 0], sizes = [2, 32], strides = [1, 1]} : vector<2x96xf32> to vector<2x32xf32>
    %127 = vector.extract_strided_slice %123 {offsets = [0, 0], sizes = [2, 32], strides = [1, 1]} : vector<2x96xf32> to vector<2x32xf32>
    %128 = arith.addf %126, %127 : vector<2x32xf32>
    %129 = arith.negf %128 : vector<2x32xf32>
    %130 = math.exp %129 : vector<2x32xf32>
    %cst_26 = arith.constant 1.000000e+00 : f32
    %131 = vector.broadcast %cst_26 : f32 to vector<2x32xf32>
    %132 = arith.addf %131, %130 : vector<2x32xf32>
    %133 = arith.divf %131, %132 : vector<2x32xf32>
    %134 = vector.extract_strided_slice %125 {offsets = [0, 32], sizes = [2, 32], strides = [1, 1]} : vector<2x96xf32> to vector<2x32xf32>
    %135 = vector.extract_strided_slice %123 {offsets = [0, 32], sizes = [2, 32], strides = [1, 1]} : vector<2x96xf32> to vector<2x32xf32>
    %136 = arith.addf %134, %135 : vector<2x32xf32>
    %137 = arith.negf %136 : vector<2x32xf32>
    %138 = math.exp %137 : vector<2x32xf32>
    %cst_27 = arith.constant 1.000000e+00 : f32
    %139 = vector.broadcast %cst_27 : f32 to vector<2x32xf32>
    %140 = arith.addf %139, %138 : vector<2x32xf32>
    %141 = arith.divf %139, %140 : vector<2x32xf32>
    %142 = vector.extract_strided_slice %125 {offsets = [0, 64], sizes = [2, 32], strides = [1, 1]} : vector<2x96xf32> to vector<2x32xf32>
    %143 = vector.extract_strided_slice %123 {offsets = [0, 64], sizes = [2, 32], strides = [1, 1]} : vector<2x96xf32> to vector<2x32xf32>
    %144 = arith.addf %143, %11 : vector<2x32xf32>
    %145 = arith.mulf %133, %144 : vector<2x32xf32>
    %146 = arith.addf %142, %145 : vector<2x32xf32>
    %147 = math.tanh %146 : vector<2x32xf32>
    %cst_28 = arith.constant 1.000000e+00 : f32
    %148 = vector.broadcast %cst_28 : f32 to vector<2x32xf32>
    %149 = arith.subf %148, %141 : vector<2x32xf32>
    %150 = arith.mulf %149, %147 : vector<2x32xf32>
    %151 = arith.mulf %141, %122 : vector<2x32xf32>
    %152 = arith.addf %150, %151 : vector<2x32xf32>
    %cst_29 = arith.constant dense<0.000000e+00> : vector<2x96xf32>
    %153 = tpu.matmul %152, %8, %cst_29 {dimension_numbers = #tpu.dot_dimension_numbers<[1], [0], [0], [1], [0, 0, 1, 1], [], []>} : vector<2x32xf32>, vector<32x96xf32>, vector<2x96xf32> -> vector<2x96xf32>
    %154 = vector.extract_strided_slice %7 {offsets = [0, 5, 0], sizes = [2, 1, 96], strides = [1, 1, 1]} : vector<2x8x96xf32> to vector<2x1x96xf32>
    %155 = vector.shape_cast %154 : vector<2x1x96xf32> to vector<2x96xf32>
    %156 = vector.extract_strided_slice %155 {offsets = [0, 0], sizes = [2, 32], strides = [1, 1]} : vector<2x96xf32> to vector<2x32xf32>
    %157 = vector.extract_strided_slice %153 {offsets = [0, 0], sizes = [2, 32], strides = [1, 1]} : vector<2x96xf32> to vector<2x32xf32>
    %158 = arith.addf %156, %157 : vector<2x32xf32>
    %159 = arith.negf %158 : vector<2x32xf32>
    %160 = math.exp %159 : vector<2x32xf32>
    %cst_30 = arith.constant 1.000000e+00 : f32
    %161 = vector.broadcast %cst_30 : f32 to vector<2x32xf32>
    %162 = arith.addf %161, %160 : vector<2x32xf32>
    %163 = arith.divf %161, %162 : vector<2x32xf32>
    %164 = vector.extract_strided_slice %155 {offsets = [0, 32], sizes = [2, 32], strides = [1, 1]} : vector<2x96xf32> to vector<2x32xf32>
    %165 = vector.extract_strided_slice %153 {offsets = [0, 32], sizes = [2, 32], strides = [1, 1]} : vector<2x96xf32> to vector<2x32xf32>
    %166 = arith.addf %164, %165 : vector<2x32xf32>
    %167 = arith.negf %166 : vector<2x32xf32>
    %168 = math.exp %167 : vector<2x32xf32>
    %cst_31 = arith.constant 1.000000e+00 : f32
    %169 = vector.broadcast %cst_31 : f32 to vector<2x32xf32>
    %170 = arith.addf %169, %168 : vector<2x32xf32>
    %171 = arith.divf %169, %170 : vector<2x32xf32>
    %172 = vector.extract_strided_slice %155 {offsets = [0, 64], sizes = [2, 32], strides = [1, 1]} : vector<2x96xf32> to vector<2x32xf32>
    %173 = vector.extract_strided_slice %153 {offsets = [0, 64], sizes = [2, 32], strides = [1, 1]} : vector<2x96xf32> to vector<2x32xf32>
    %174 = arith.addf %173, %11 : vector<2x32xf32>
    %175 = arith.mulf %163, %174 : vector<2x32xf32>
    %176 = arith.addf %172, %175 : vector<2x32xf32>
    %177 = math.tanh %176 : vector<2x32xf32>
    %cst_32 = arith.constant 1.000000e+00 : f32
    %178 = vector.broadcast %cst_32 : f32 to vector<2x32xf32>
    %179 = arith.subf %178, %171 : vector<2x32xf32>
    %180 = arith.mulf %179, %177 : vector<2x32xf32>
    %181 = arith.mulf %171, %152 : vector<2x32xf32>
    %182 = arith.addf %180, %181 : vector<2x32xf32>
    %cst_33 = arith.constant dense<0.000000e+00> : vector<2x96xf32>
    %183 = tpu.matmul %182, %8, %cst_33 {dimension_numbers = #tpu.dot_dimension_numbers<[1], [0], [0], [1], [0, 0, 1, 1], [], []>} : vector<2x32xf32>, vector<32x96xf32>, vector<2x96xf32> -> vector<2x96xf32>
    %184 = vector.extract_strided_slice %7 {offsets = [0, 6, 0], sizes = [2, 1, 96], strides = [1, 1, 1]} : vector<2x8x96xf32> to vector<2x1x96xf32>
    %185 = vector.shape_cast %184 : vector<2x1x96xf32> to vector<2x96xf32>
    %186 = vector.extract_strided_slice %185 {offsets = [0, 0], sizes = [2, 32], strides = [1, 1]} : vector<2x96xf32> to vector<2x32xf32>
    %187 = vector.extract_strided_slice %183 {offsets = [0, 0], sizes = [2, 32], strides = [1, 1]} : vector<2x96xf32> to vector<2x32xf32>
    %188 = arith.addf %186, %187 : vector<2x32xf32>
    %189 = arith.negf %188 : vector<2x32xf32>
    %190 = math.exp %189 : vector<2x32xf32>
    %cst_34 = arith.constant 1.000000e+00 : f32
    %191 = vector.broadcast %cst_34 : f32 to vector<2x32xf32>
    %192 = arith.addf %191, %190 : vector<2x32xf32>
    %193 = arith.divf %191, %192 : vector<2x32xf32>
    %194 = vector.extract_strided_slice %185 {offsets = [0, 32], sizes = [2, 32], strides = [1, 1]} : vector<2x96xf32> to vector<2x32xf32>
    %195 = vector.extract_strided_slice %183 {offsets = [0, 32], sizes = [2, 32], strides = [1, 1]} : vector<2x96xf32> to vector<2x32xf32>
    %196 = arith.addf %194, %195 : vector<2x32xf32>
    %197 = arith.negf %196 : vector<2x32xf32>
    %198 = math.exp %197 : vector<2x32xf32>
    %cst_35 = arith.constant 1.000000e+00 : f32
    %199 = vector.broadcast %cst_35 : f32 to vector<2x32xf32>
    %200 = arith.addf %199, %198 : vector<2x32xf32>
    %201 = arith.divf %199, %200 : vector<2x32xf32>
    %202 = vector.extract_strided_slice %185 {offsets = [0, 64], sizes = [2, 32], strides = [1, 1]} : vector<2x96xf32> to vector<2x32xf32>
    %203 = vector.extract_strided_slice %183 {offsets = [0, 64], sizes = [2, 32], strides = [1, 1]} : vector<2x96xf32> to vector<2x32xf32>
    %204 = arith.addf %203, %11 : vector<2x32xf32>
    %205 = arith.mulf %193, %204 : vector<2x32xf32>
    %206 = arith.addf %202, %205 : vector<2x32xf32>
    %207 = math.tanh %206 : vector<2x32xf32>
    %cst_36 = arith.constant 1.000000e+00 : f32
    %208 = vector.broadcast %cst_36 : f32 to vector<2x32xf32>
    %209 = arith.subf %208, %201 : vector<2x32xf32>
    %210 = arith.mulf %209, %207 : vector<2x32xf32>
    %211 = arith.mulf %201, %182 : vector<2x32xf32>
    %212 = arith.addf %210, %211 : vector<2x32xf32>
    %cst_37 = arith.constant dense<0.000000e+00> : vector<2x96xf32>
    %213 = tpu.matmul %212, %8, %cst_37 {dimension_numbers = #tpu.dot_dimension_numbers<[1], [0], [0], [1], [0, 0, 1, 1], [], []>} : vector<2x32xf32>, vector<32x96xf32>, vector<2x96xf32> -> vector<2x96xf32>
    %214 = vector.extract_strided_slice %7 {offsets = [0, 7, 0], sizes = [2, 1, 96], strides = [1, 1, 1]} : vector<2x8x96xf32> to vector<2x1x96xf32>
    %215 = vector.shape_cast %214 : vector<2x1x96xf32> to vector<2x96xf32>
    %216 = vector.extract_strided_slice %215 {offsets = [0, 0], sizes = [2, 32], strides = [1, 1]} : vector<2x96xf32> to vector<2x32xf32>
    %217 = vector.extract_strided_slice %213 {offsets = [0, 0], sizes = [2, 32], strides = [1, 1]} : vector<2x96xf32> to vector<2x32xf32>
    %218 = arith.addf %216, %217 : vector<2x32xf32>
    %219 = arith.negf %218 : vector<2x32xf32>
    %220 = math.exp %219 : vector<2x32xf32>
    %cst_38 = arith.constant 1.000000e+00 : f32
    %221 = vector.broadcast %cst_38 : f32 to vector<2x32xf32>
    %222 = arith.addf %221, %220 : vector<2x32xf32>
    %223 = arith.divf %221, %222 : vector<2x32xf32>
    %224 = vector.extract_strided_slice %215 {offsets = [0, 32], sizes = [2, 32], strides = [1, 1]} : vector<2x96xf32> to vector<2x32xf32>
    %225 = vector.extract_strided_slice %213 {offsets = [0, 32], sizes = [2, 32], strides = [1, 1]} : vector<2x96xf32> to vector<2x32xf32>
    %226 = arith.addf %224, %225 : vector<2x32xf32>
    %227 = arith.negf %226 : vector<2x32xf32>
    %228 = math.exp %227 : vector<2x32xf32>
    %cst_39 = arith.constant 1.000000e+00 : f32
    %229 = vector.broadcast %cst_39 : f32 to vector<2x32xf32>
    %230 = arith.addf %229, %228 : vector<2x32xf32>
    %231 = arith.divf %229, %230 : vector<2x32xf32>
    %232 = vector.extract_strided_slice %215 {offsets = [0, 64], sizes = [2, 32], strides = [1, 1]} : vector<2x96xf32> to vector<2x32xf32>
    %233 = vector.extract_strided_slice %213 {offsets = [0, 64], sizes = [2, 32], strides = [1, 1]} : vector<2x96xf32> to vector<2x32xf32>
    %234 = arith.addf %233, %11 : vector<2x32xf32>
    %235 = arith.mulf %223, %234 : vector<2x32xf32>
    %236 = arith.addf %232, %235 : vector<2x32xf32>
    %237 = math.tanh %236 : vector<2x32xf32>
    %cst_40 = arith.constant 1.000000e+00 : f32
    %238 = vector.broadcast %cst_40 : f32 to vector<2x32xf32>
    %239 = arith.subf %238, %231 : vector<2x32xf32>
    %240 = arith.mulf %239, %237 : vector<2x32xf32>
    %241 = arith.mulf %231, %212 : vector<2x32xf32>
    %242 = arith.addf %240, %241 : vector<2x32xf32>
    %c0_41 = arith.constant 0 : index
    %c0_42 = arith.constant 0 : index
    %243 = vector.load %arg6[%c0_41, %c0_42] : memref<2x32xf32, #tpu.memory_space<vmem>>, vector<2x32xf32>
    tpu.vector_store %arg6[%c0_41, %c0_42], %242 {strides = array<i32>} : memref<2x32xf32, #tpu.memory_space<vmem>>, vector<2x32xf32>,
    return
  }
  func.func @transform_0(%arg0: i32) -> (i32, i32, i32) {
    %c0_i32 = arith.constant 0 : i32
    %c0_i32_0 = arith.constant 0 : i32
    %c0_i32_1 = arith.constant 0 : i32
    %c0_i32_2 = arith.constant 0 : i32
    return %c0_i32, %c0_i32_0, %c0_i32_1 : i32, i32, i32
  }
  func.func @transform_1(%arg0: i32) -> (i32, i32) {
    %c0_i32 = arith.constant 0 : i32
    %c0_i32_0 = arith.constant 0 : i32
    %c0_i32_1 = arith.constant 0 : i32
    return %c0_i32, %c0_i32_0 : i32, i32
  }
  func.func @transform_2(%arg0: i32) -> (i32, i32) {
    %c0_i32 = arith.constant 0 : i32
    %c0_i32_0 = arith.constant 0 : i32
    %c0_i32_1 = arith.constant 0 : i32
    return %c0_i32, %c0_i32_0 : i32, i32
  }
  func.func @transform_3(%arg0: i32) -> (i32, i32) {
    %c0_i32 = arith.constant 0 : i32
    %c0_i32_0 = arith.constant 0 : i32
    %c0_i32_1 = arith.constant 0 : i32
    return %c0_i32, %c0_i32_0 : i32, i32
  }
  func.func @transform_4(%arg0: i32) -> (i32, i32) {
    %c0_i32 = arith.constant 0 : i32
    %c0_i32_0 = arith.constant 0 : i32
    %c0_i32_1 = arith.constant 0 : i32
    return %c0_i32, %c0_i32_0 : i32, i32
  }
  func.func @transform_5(%arg0: i32) -> (i32, i32) {
    %c0_i32 = arith.constant 0 : i32
    %c0_i32_0 = arith.constant 0 : i32
    %c0_i32_1 = arith.constant 0 : i32
    return %c0_i32, %c0_i32_0 : i32, i32
  }
}

</mosaic_0001>

<bundles_post_ra>
// kernel: tpu_custom_call.1
= control target key start
LH: loop header
LB: loop body
LE: loop exit
PB: predicated region body
PF: predicated region fallthrough
CT: control target
= control target key end

     0   :  { %10 = vsyncpa [#allocation3], 0  ;;  %s1909_s0 = inlined_call_operand.hbm [shape: f32[2,8,32], index: 0, kind: input, shape index: {}]   ;;  %s1910_s1 = inlined_call_operand.hbm [shape: f32[32,96], index: 1, kind: input, shape index: {}]   ;;  %s1911_s2 = inlined_call_operand.hbm [shape: f32[32,96], index: 2, kind: input, shape index: {}]   ;;  %s1912_s3 = inlined_call_operand.vmem [shape: f32[1,96], index: 3, kind: input, shape index: {}]   ;;  %s1913_s4 = inlined_call_operand.vmem [shape: f32[1,32], index: 4, kind: input, shape index: {}]   ;;  %s1914_s5 = inlined_call_operand.hbm [shape: f32[2,32], index: 5, kind: output, shape index: {}]  }
   0x1   :  { %11 = vsyncpa [#allocation6], 0 }
   0x2   :  { %12 = vsyncpa [#allocation4], 0  ;;  %s1635_s18 = smov [#allocation5]   ;;  %s1636_s20 = smov [#allocation2]  }
   0x3   :  { %s30_s19 = sshll.u32 %s1635_s18, 4  ;;  %s18_s21 = sshll.u32 %s1636_s20, 4  ;;  %s31_s19 = int_to_ptr.vmem [resolvable:$true] %s30_s19  ;;  %s1676_s21 = int_to_ptr.vmem [resolvable:$true] %s18_s21 }
   0x4   :  { %s1541_s24 = scalar_lea.hbm %s1910_s1, 512 }
   0x5   :  { %p1542_p0 = scmp.ne.s32.totalorder %s1910_s1, %s1541_s24  ;;  %p1545_p1 = scmp.lt.u32.totalorder %s1541_s24, %s1910_s1 }
   0x7   :  { %p1547_p2 = pnand %p1545_p1, %p1542_p0 }
   0x9   :  { %1550 = shalt.err (!%p1547_p2)
}
   0xa   :  { %s1551_s29 = scalar_lea.vmem %s31_s19, 512  ;;  %p1556_p4 = scmp.lt.s32.totalorder %s31_s19, %s31_s19 }
   0xb   :  { %p1552_p3 = scmp.ne.s32.totalorder %s31_s19, %s1551_s29  ;;  %p1557_p5 = scmp.lt.s32.totalorder %s1551_s29, %s1551_s29 }
   0xd   :  { %p1558_p6 = por %p1557_p5, %p1556_p4 }
   0xf   :  { %p1559_p7 = pnand %p1558_p6, %p1552_p3 }
  0x11   :  { %1562 = shalt.err (!%p1559_p7)
}
  0x12   :  { %s1637_s30 = smov 128   ;;  %s1638_s6 = smov 8  }
  0x13   :  { %36 = dma.hbm_to_vmem [thread:$0]  %s1910_s1, 512, %s31_s19, [#allocation6], %s1637_s30, %s1637_s30, %s1638_s6  }
  0x14   :  { %s1563_s11 = scalar_lea.hbm %s1909_s0, 256 }
  0x15   :  { %p1564_p8 = scmp.ne.s32.totalorder %s1909_s0, %s1563_s11  ;;  %p1567_p9 = scmp.lt.u32.totalorder %s1563_s11, %s1909_s0 }
  0x17   :  { %p1569_p10 = pnand %p1567_p9, %p1564_p8 }
  0x19   :  { %1572 = shalt.err (!%p1569_p10)
}
  0x1a   :  { %s1573_s16 = scalar_lea.vmem %s1676_s21, 256  ;;  %p1578_p12 = scmp.lt.s32.totalorder %s1676_s21, %s1676_s21 }
  0x1b   :  { %p1574_p11 = scmp.ne.s32.totalorder %s1676_s21, %s1573_s16  ;;  %p1579_p13 = scmp.lt.s32.totalorder %s1573_s16, %s1573_s16 }
  0x1d   :  { %p1580_p0 = por %p1579_p13, %p1578_p12 }
  0x1f   :  { %p1581_p1 = pnand %p1580_p0, %p1574_p11 }
  0x21   :  { %1584 = shalt.err (!%p1581_p1)
}
  0x22   :  { %24 = dma.hbm_to_vmem [thread:$0]  %s1909_s0, 256, %s1676_s21, [#allocation3], %s1637_s30, %s1637_s30, %s1638_s6  }
  0x23   :  { %s1639_s18 = smov [#allocation7]   ;;  %s1585_s23 = scalar_lea.hbm %s1911_s2, 512 }
  0x24   :  { %s42_s19 = sshll.u32 %s1639_s18, 4  ;;  %p1586_p2 = scmp.ne.s32.totalorder %s1911_s2, %s1585_s23  ;;  %s43_s19 = int_to_ptr.vmem [resolvable:$true] %s42_s19 }
  0x25   :  { %p1589_p3 = scmp.lt.u32.totalorder %s1585_s23, %s1911_s2 }
  0x27   :  { %p1591_p4 = pnand %p1589_p3, %p1586_p2 }
  0x29   :  { %1594 = shalt.err (!%p1591_p4)
}
  0x2a   :  { %s1595_s28 = scalar_lea.vmem %s43_s19, 512  ;;  %p1600_p6 = scmp.lt.s32.totalorder %s43_s19, %s43_s19 }
  0x2b   :  { %p1596_p5 = scmp.ne.s32.totalorder %s43_s19, %s1595_s28  ;;  %p1601_p7 = scmp.lt.s32.totalorder %s1595_s28, %s1595_s28 }
  0x2d   :  { %p1602_p8 = por %p1601_p7, %p1600_p6 }
  0x2f   :  { %p1603_p9 = pnand %p1602_p8, %p1596_p5 }
  0x31   :  { %1606 = shalt.err (!%p1603_p9)
}
  0x32   :  { %48 = dma.hbm_to_vmem [thread:$0]  %s1911_s2, 512, %s43_s19, [#allocation6], %s1637_s30, %s1637_s30, %s1638_s6  }
  0x33   :  { %1629 = dma.done.wait [#allocation3], 256  }
  0x34   :  { %1630 = vsyncadd [#allocation3], 4294967040 }
  0x35   :  { %1631 = dma.done.wait [#allocation6], 1024  }
  0x36   :  { %1632 = vsyncadd [#allocation6], 4294966272  ;;  %vm75_vm0 = vcmask 261120   ;;  %v64_v0 = vld [vmem:[#allocation5] sm:$0xff]  ;;  %v65_v1 = vld [vmem:[#allocation5 + $0x8] sm:$0xff]  ;;  %s1640_s6 = smov 64  }
  0x37   :  { %v66_v2 = vld [vmem:[#allocation5 + $0x10] sm:$0xff]  ;;  %v1384_v3 = vpack.c.bf16 %v65_v1, %v64_v0  ;;  %v67_v4 = vld [vmem:[#allocation5 + $0x18] sm:$0xff]  ;;  %v157_v28 = vld [vmem:[#allocation7] sm:$0xff]  ;;  %v1641_v31 = vmov 0.0|0.0   ;;  %vm1642_vm1 = vmmov 0   ;;  %v1643_v34 = vmov 0.0  }
  0x38   :  { %v62_v5 = vld [vmem:[#allocation2] sm:$0xff]  ;;  %v1388_v6 = vpack.c.bf16 %v67_v4, %v66_v2  ;;  %v63_v7 = vld [vmem:[#allocation2 + $0x8] sm:$0xff]  ;;  %v158_v29 = vld [vmem:[#allocation7 + $0x8] sm:$0xff]  ;;  %1392 = vmatprep.subr.bf16.mxu1 %v1641_v31  ;;  %1315 = vmatprep.mubr.msk.f32.mxu1 %vm1642_vm1, %v1643_v34  ;;  %vm209_vm2 = vcmask 1041409   ;;  %s1645_s7 = smov [#allocation8]   ;;  %vm1208_vm3 = vcmask 261127  }
  0x39   :  { %1304 = vmatprep.mubr.msk.f32.mxu0 %vm75_vm0, %v62_v5  ;;  %1385 = vmatprep.subr.bf16.mxu0 %v1384_v3  ;;  %v1228_v8 = vld [vmem:[%s1912_s3] ss:$0 sm:$0xff]  ;;  %v1747_v32 = vpack.c.bf16 %v158_v29, %v157_v28  ;;  %v160_v33 = vld [vmem:[#allocation7 + $0x18] sm:$0xff]  ;;  %s1218_s8 = sshll.u32 %s1645_s7, 4  ;;  %vm1210_vm4 = vcmask 253952   ;;  %s1219_s8 = int_to_ptr.vmem [resolvable:$true] %s1218_s8 }
  0x3a   :  { %1387 = vmatpush3.bf16.msra.mxu0 %v1384_v3  ;;  %v1231_v19 = vld [vmem:[%s1913_s4] ss:$0 sm:$0xff]  ;;  %s1644_s4 = smov 96   ;;  %s1607_s9 = scalar_lea.vmem %s1219_s8, 32 }
  0x3b   :  { %1389 = vmatprep.subr.bf16.mxu0 %v1388_v6  ;;  %v159_v30 = vld [vmem:[#allocation7 + $0x10] sm:$0xff]  ;;  %1394 = vmatpush3.bf16.msra.mxu1 %v1747_v32  ;;  %p1608_p10 = scmp.ne.s32.totalorder %s1219_s8, %s1607_s9  ;;  %p1612_p11 = scmp.lt.s32.totalorder %s1219_s8, %s1219_s8 }
  0x3c   :  { %v1755_v35 = vpack.c.bf16 %v160_v33, %v159_v30  ;;  %1395 = vmatprep.subr.bf16.mxu1 %v1641_v31  ;;  %p1613_p12 = scmp.lt.s32.totalorder %s1607_s9, %s1607_s9 }
  0x3e   :  { %1391 = vmatpush3.bf16.msra.mxu0 %v1388_v6  ;;  %p1614_p13 = por %p1613_p12, %p1612_p11 }
  0x3f   :  { %1398 = vmatprep.subr.bf16.mxu0 %v1641_v31  ;;  %1397 = vmatpush3.bf16.msra.mxu1 %v1755_v35 }
  0x40   :  { %1404 = vmatprep.subr.bf16.mxu1 %v1641_v31  ;;  %p1615_p0 = pnand %p1614_p13, %p1608_p10 }
  0x41   :  { %1305 = vmatmul.mubr.msk.f32.vlgmr.msra.gmra.mrb[0].mxu0 %vm75_vm0, %v63_v7 }
  0x42   :  { %1326 = vmatprep.mubr.msk.f32.mxu0 %vm1642_vm1, %v1643_v34  ;;  %1400 = vmatpush3.bf16.msra.mxu0 %v1747_v32 }
  0x43   :  { %1401 = vmatprep.subr.bf16.mxu0 %v1641_v31 }
  0x46   :  { %1403 = vmatpush3.bf16.msra.mxu0 %v1755_v35 }
  0x47   :  { %1410 = vmatprep.subr.bf16.mxu0 %v1641_v31 }
 0x114   :  { %v1306_v9 = vpop.f32.mrb[0].mxu0 }
 0x115   :  { %v1733_v10 = vadd.f32 %v1306_v9, %v1228_v8  ;;  %v148_v11 = vpop.f32.mrb[1].mxu0 }
 0x116   :  { %v1735_v12 = vadd.f32 %v1228_v8, %v148_v11 }
 0x117   :  { %v1233_v13 = vmul.f32 -1.442695, %v1733_v10 }
 0x118   :  { %v1232_v14 = vmul.f32 -1.442695, %v1735_v12 }
 0x119   :  { %1445 = vpow2.f32 %v1233_v13 }
 0x11a   :  { %1447 = vpow2.f32 %v1232_v14 }
 0x123   :  { %v1446_v15 = vpop.eup %1445 }
 0x124   :  { %v1448_v16 = vpop.eup %1447  ;;  %v175_v17 = vadd.f32 1.0, %v1446_v15 }
 0x125   :  { %v174_v18 = vadd.f32 1.0, %v1448_v16 }
 0x126   :  { %1449 = vrcp.f32 %v175_v17 }
 0x127   :  { %1451 = vrcp.f32 %v174_v18 }
 0x130   :  { %v1450_v20 = vpop.eup %1449 }
 0x131   :  { %v181_v21 = vmul.f32 %v1450_v20, %v1231_v19  ;;  %v1452_v22 = vpop.eup %1451  ;;  %v195_v38 = vsub.f32 1.0, %v1450_v20 }
 0x132   :  { %v180_v23 = vmul.f32 %v1452_v22, %v1231_v19  ;;  %v194_v41 = vsub.f32 1.0, %v1452_v22 }
 0x133   :  { %186 = vrot.lane.b32.xlu0 %v181_v21, %s1640_s6 }
 0x137   :  { %184 = vrot.lane.b32.xlu0 %v180_v23, %s1640_s6 }
 0x1a5   :  { %v187_v24 = vpop.permute.xlu0 %186 }
 0x1a6   :  { %v191_v25 = vadd.f32 %v187_v24, %v1733_v10 }
 0x1a8   :  { %1453 = vtanh.f32 %v191_v25 }
 0x1a9   :  { %v185_v26 = vpop.permute.xlu0 %184 }
 0x1aa   :  { %v190_v27 = vadd.f32 %v185_v26, %v1735_v12 }
 0x1ac   :  { %1455 = vtanh.f32 %v190_v27 }
 0x1b2   :  { %v1454_v36 = vpop.eup %1453 }
 0x1b3   :  { %200 = vrot.lane.b32.xlu1 %v1454_v36, %s1644_s4 }
 0x1b6   :  { %v1456_v37 = vpop.eup %1455 }
 0x1b7   :  { %198 = vrot.lane.b32.xlu1 %v1456_v37, %s1644_s4 }
 0x1bb   :  { %303 = vrot.lane.b32.xlu1 %v1231_v19, %s1640_s6 }
 0x225   :  { %v201_v39 = vpop.permute.xlu1 %200 }
 0x226   :  { %v205_v40 = vmul.f32 %v201_v39, %v195_v38 }
 0x228   :  { %v208_v43 = vrot.slane %v205_v40, 7 }
 0x229   :  { %v199_v42 = vpop.permute.xlu1 %198 }
 0x22a   :  { %v204_v44 = vmul.f32 %v199_v42, %v194_v41 }
 0x22c   :  { %v210_v45 = vsel %vm209_vm2, %v208_v43, %v204_v44  ;;  %v341_v11 = vrot.slane %v204_v44, 7 }
 0x22d   :  { %211 = vrot.lane.b32.xlu0 %v210_v45, %s1644_s4  ;;  %v1776_v47 = vpop.permute.xlu1 %303 }
 0x29f   :  { %v212_v46 = vpop.permute.xlu0 %211 }
 0x2a0   :  { %1316 = vmatmul.mubr.msk.f32.vlgmr.msra.gmra.mrb[0].mxu1 %vm75_vm0, %v212_v46 }
 0x2a1   :  { %1406 = vmatpush3.bf16.msra.mxu1 %v1747_v32  ;;  %1337 = vmatprep.mubr.msk.f32.mxu1 %vm1642_vm1, %v1643_v34 }
 0x2a2   :  { %1407 = vmatprep.subr.bf16.mxu1 %v1641_v31 }
 0x2a5   :  { %1409 = vmatpush3.bf16.msra.mxu1 %v1755_v35 }
 0x2a6   :  { %1416 = vmatprep.subr.bf16.mxu1 %v1641_v31 }
 0x373   :  { %v281_v48 = vpop.f32.mrb[0].mxu1 }
 0x374   :  { %v1317_v49 = vpop.f32.mrb[1].mxu1  ;;  %v306_v50 = vadd.f32 %v1776_v47, %v281_v48  ;;  %v286_v52 = vrot.slane %v281_v48, 7  ;;  %v290_v53 = vadd.f32 %v281_v48, %v1733_v10 }
 0x376   :  { %311 = vrot.lane.b32.xlu1 %v306_v50, %s1640_s6  ;;  %v308_v51 = vrot.slane %v306_v50, 7  ;;  %v289_v54 = vadd.f32 %v286_v52, %v1735_v12  ;;  %v1236_v55 = vmul.f32 -1.442695, %v290_v53 }
 0x378   :  { %309 = vrot.lane.b32.xlu0 %v308_v51, %s1640_s6  ;;  %v1235_v56 = vmul.f32 -1.442695, %v289_v54  ;;  %1457 = vpow2.f32 %v1236_v55 }
 0x37a   :  { %1459 = vpow2.f32 %v1235_v56 }
 0x382   :  { %v1458_v57 = vpop.eup %1457 }
 0x383   :  { %v298_v59 = vadd.f32 1.0, %v1458_v57 }
 0x384   :  { %v1460_v58 = vpop.eup %1459 }
 0x385   :  { %v297_v60 = vadd.f32 1.0, %v1460_v58  ;;  %1461 = vrcp.f32 %v298_v59 }
 0x387   :  { %1463 = vrcp.f32 %v297_v60 }
 0x38f   :  { %v1462_v61 = vpop.eup %1461 }
 0x390   :  { %v330_v13 = vsub.f32 1.0, %v1462_v61  ;;  %v345_v19 = vmul.f32 %v1462_v61, %v208_v43 }
 0x391   :  { %v1464_v0 = vpop.eup %1463 }
 0x392   :  { %v329_v14 = vsub.f32 1.0, %v1464_v0  ;;  %v344_v17 = vmul.f32 %v1464_v0, %v341_v11 }
 0x3e8   :  { %v312_v62 = vpop.permute.xlu1 %311 }
 0x3e9   :  { %v316_v63 = vmul.f32 %v1462_v61, %v312_v62 }
 0x3ea   :  { %v310_v1 = vpop.permute.xlu0 %309 }
 0x3eb   :  { %v315_v2 = vmul.f32 %v1464_v0, %v310_v1  ;;  %321 = vrot.lane.b32.xlu1 %v316_v63, %s1640_s6 }
 0x3ed   :  { %319 = vrot.lane.b32.xlu0 %v315_v2, %s1640_s6 }
 0x45d   :  { %v322_v3 = vpop.permute.xlu1 %321 }
 0x45e   :  { %v326_v4 = vadd.f32 %v322_v3, %v1733_v10 }
 0x45f   :  { %v320_v5 = vpop.permute.xlu0 %319 }
 0x460   :  { %1465 = vtanh.f32 %v326_v4  ;;  %v325_v6 = vadd.f32 %v320_v5, %v1735_v12 }
 0x462   :  { %1467 = vtanh.f32 %v325_v6 }
 0x46a   :  { %v1466_v7 = vpop.eup %1465 }
 0x46b   :  { %335 = vrot.lane.b32.xlu1 %v1466_v7, %s1644_s4 }
 0x46c   :  { %v1468_v8 = vpop.eup %1467 }
 0x46d   :  { %333 = vrot.lane.b32.xlu0 %v1468_v8, %s1644_s4 }
 0x4dd   :  { %v336_v9 = vpop.permute.xlu1 %335 }
 0x4de   :  { %v340_v16 = vmul.f32 %v336_v9, %v330_v13 }
 0x4df   :  { %v334_v15 = vpop.permute.xlu0 %333 }
 0x4e0   :  { %v339_v18 = vmul.f32 %v334_v15, %v329_v14  ;;  %v347_v21 = vadd.f32 %v345_v19, %v340_v16 }
 0x4e2   :  { %v346_v20 = vadd.f32 %v344_v17, %v339_v18  ;;  %v482_v57 = vrot.slane %v347_v21, 7 }
 0x4e4   :  { %v350_v22 = vrot.slane %v346_v20, 1  ;;  %v481_v59 = vrot.slane %v346_v20, 7 }
 0x4e6   :  { %v351_v23 = vsel %vm209_vm2, %v347_v21, %v350_v22 }
 0x4e7   :  { %352 = vrot.lane.b32.xlu0 %v351_v23, %s1644_s4 }
 0x559   :  { %v353_v24 = vpop.permute.xlu0 %352 }
 0x55a   :  { %1327 = vmatmul.mubr.msk.f32.vlgmr.msra.gmra.mrb[2].mxu0 %vm75_vm0, %v353_v24 }
 0x55b   :  { %1412 = vmatpush3.bf16.msra.mxu0 %v1747_v32  ;;  %1348 = vmatprep.mubr.msk.f32.mxu0 %vm1642_vm1, %v1643_v34 }
 0x55c   :  { %1413 = vmatprep.subr.bf16.mxu0 %v1641_v31 }
 0x55f   :  { %1415 = vmatpush3.bf16.msra.mxu0 %v1755_v35 }
 0x560   :  { %1422 = vmatprep.subr.bf16.mxu0 %v1641_v31 }
 0x62d   :  { %v422_v25 = vpop.f32.mrb[2].mxu0 }
 0x62e   :  { %v445_v26 = vadd.f32 %v422_v25, %v1776_v47  ;;  %v1328_v27 = vpop.f32.mrb[3].mxu0  ;;  %v427_v30 = vrot.slane %v422_v25, 6  ;;  %v428_v33 = vrot.slane %v422_v25, 7 }
 0x630   :  { %v448_v28 = vrot.slane %v445_v26, 7  ;;  %v447_v29 = vrot.slane %v445_v26, 6  ;;  %v431_v36 = vadd.f32 %v427_v30, %v1735_v12  ;;  %v432_v37 = vadd.f32 %v428_v33, %v1733_v10 }
 0x632   :  { %451 = vrot.lane.b32.xlu0 %v448_v28, %s1640_s6  ;;  %449 = vrot.lane.b32.xlu1 %v447_v29, %s1640_s6  ;;  %v1238_v38 = vmul.f32 -1.442695, %v431_v36  ;;  %v1239_v39 = vmul.f32 -1.442695, %v432_v37 }
 0x634   :  { %1469 = vpow2.f32 %v1238_v38 }
 0x635   :  { %1471 = vpow2.f32 %v1239_v39 }
 0x63e   :  { %v1470_v40 = vpop.eup %1469 }
 0x63f   :  { %v1472_v41 = vpop.eup %1471  ;;  %v439_v42 = vadd.f32 1.0, %v1470_v40 }
 0x640   :  { %v440_v43 = vadd.f32 1.0, %v1472_v41 }
 0x641   :  { %1473 = vrcp.f32 %v439_v42 }
 0x642   :  { %1475 = vrcp.f32 %v440_v43 }
 0x64b   :  { %v1474_v44 = vpop.eup %1473 }
 0x64c   :  { %v1476_v45 = vpop.eup %1475  ;;  %v469_v61 = vsub.f32 1.0, %v1474_v44  ;;  %v485_v1 = vmul.f32 %v1474_v44, %v481_v59 }
 0x64d   :  { %v470_v58 = vsub.f32 1.0, %v1476_v45  ;;  %v486_v62 = vmul.f32 %v1476_v45, %v482_v57 }
 0x6a4   :  { %v452_v46 = vpop.permute.xlu0 %451  ;;  %v450_v48 = vpop.permute.xlu1 %449 }
 0x6a5   :  { %v456_v49 = vmul.f32 %v1476_v45, %v452_v46  ;;  %v455_v50 = vmul.f32 %v1474_v44, %v450_v48 }
 0x6a7   :  { %461 = vrot.lane.b32.xlu0 %v456_v49, %s1640_s6  ;;  %459 = vrot.lane.b32.xlu1 %v455_v50, %s1640_s6 }
 0x719   :  { %v462_v51 = vpop.permute.xlu0 %461  ;;  %v460_v52 = vpop.permute.xlu1 %459 }
 0x71a   :  { %v466_v53 = vadd.f32 %v462_v51, %v1733_v10  ;;  %v465_v54 = vadd.f32 %v460_v52, %v1735_v12 }
 0x71c   :  { %1477 = vtanh.f32 %v466_v53 }
 0x71d   :  { %1479 = vtanh.f32 %v465_v54 }
 0x726   :  { %v1478_v55 = vpop.eup %1477 }
 0x727   :  { %v1480_v56 = vpop.eup %1479  ;;  %475 = vrot.lane.b32.xlu0 %v1478_v55, %s1644_s4 }
 0x728   :  { %473 = vrot.lane.b32.xlu1 %v1480_v56, %s1644_s4 }
 0x799   :  { %v476_v60 = vpop.permute.xlu0 %475 }
 0x79a   :  { %v480_v63 = vmul.f32 %v476_v60, %v470_v58  ;;  %v474_v0 = vpop.permute.xlu1 %473 }
 0x79b   :  { %v479_v2 = vmul.f32 %v474_v0, %v469_v61 }
 0x79c   :  { %v488_v3 = vadd.f32 %v486_v62, %v480_v63 }
 0x79d   :  { %v487_v4 = vadd.f32 %v485_v1, %v479_v2 }
 0x79e   :  { %v492_v5 = vrot.slane %v488_v3, 1  ;;  %v624_v42 = vrot.slane %v488_v3, 7 }
 0x79f   :  { %v491_v6 = vrot.slane %v487_v4, 2  ;;  %v623_v44 = vrot.slane %v487_v4, 7 }
 0x7a1   :  { %v493_v7 = vsel %vm209_vm2, %v492_v5, %v491_v6 }
 0x7a2   :  { %494 = vrot.lane.b32.xlu1 %v493_v7, %s1644_s4 }
 0x814   :  { %v495_v8 = vpop.permute.xlu1 %494 }
 0x815   :  { %1338 = vmatmul.mubr.msk.f32.vlgmr.msra.gmra.mrb[2].mxu1 %vm75_vm0, %v495_v8 }
 0x816   :  { %1418 = vmatpush3.bf16.msra.mxu1 %v1747_v32  ;;  %1359 = vmatprep.mubr.msk.f32.mxu1 %vm1642_vm1, %v1643_v34 }
 0x817   :  { %1419 = vmatprep.subr.bf16.mxu1 %v1641_v31 }
 0x81a   :  { %1421 = vmatpush3.bf16.msra.mxu1 %v1755_v35 }
 0x81b   :  { %1428 = vmatprep.subr.bf16.mxu1 %v1641_v31 }
 0x8e8   :  { %v564_v9 = vpop.f32.mrb[2].mxu1 }
 0x8e9   :  { %v587_v11 = vadd.f32 %v564_v9, %v1776_v47  ;;  %v1339_v13 = vpop.f32.mrb[3].mxu1  ;;  %v569_v16 = vrot.slane %v564_v9, 5  ;;  %v570_v17 = vrot.slane %v564_v9, 6 }
 0x8eb   :  { %v590_v14 = vrot.slane %v587_v11, 6  ;;  %v589_v15 = vrot.slane %v587_v11, 5  ;;  %v573_v18 = vadd.f32 %v569_v16, %v1735_v12  ;;  %v574_v19 = vadd.f32 %v570_v17, %v1733_v10 }
 0x8ed   :  { %593 = vrot.lane.b32.xlu1 %v590_v14, %s1640_s6  ;;  %591 = vrot.lane.b32.xlu0 %v589_v15, %s1640_s6  ;;  %v1241_v20 = vmul.f32 -1.442695, %v573_v18  ;;  %v1242_v21 = vmul.f32 -1.442695, %v574_v19 }
 0x8ef   :  { %1481 = vpow2.f32 %v1241_v20 }
 0x8f0   :  { %1483 = vpow2.f32 %v1242_v21 }
 0x8f9   :  { %v1482_v22 = vpop.eup %1481 }
 0x8fa   :  { %v1484_v23 = vpop.eup %1483  ;;  %v581_v24 = vadd.f32 1.0, %v1482_v22 }
 0x8fb   :  { %v582_v25 = vadd.f32 1.0, %v1484_v23 }
 0x8fc   :  { %1485 = vrcp.f32 %v581_v24 }
 0x8fd   :  { %1487 = vrcp.f32 %v582_v25 }
 0x906   :  { %v1486_v26 = vpop.eup %1485 }
 0x907   :  { %v1488_v27 = vpop.eup %1487  ;;  %v611_v46 = vsub.f32 1.0, %v1486_v26  ;;  %v627_v51 = vmul.f32 %v1486_v26, %v623_v44 }
 0x908   :  { %v612_v43 = vsub.f32 1.0, %v1488_v27  ;;  %v628_v48 = vmul.f32 %v1488_v27, %v624_v42 }
 0x95f   :  { %v594_v28 = vpop.permute.xlu1 %593  ;;  %v592_v29 = vpop.permute.xlu0 %591 }
 0x960   :  { %v598_v30 = vmul.f32 %v1488_v27, %v594_v28  ;;  %v597_v33 = vmul.f32 %v1486_v26, %v592_v29 }
 0x962   :  { %603 = vrot.lane.b32.xlu1 %v598_v30, %s1640_s6  ;;  %601 = vrot.lane.b32.xlu0 %v597_v33, %s1640_s6 }
 0x9d4   :  { %v604_v36 = vpop.permute.xlu1 %603  ;;  %v602_v37 = vpop.permute.xlu0 %601 }
 0x9d5   :  { %v608_v38 = vadd.f32 %v604_v36, %v1733_v10  ;;  %v607_v39 = vadd.f32 %v602_v37, %v1735_v12 }
 0x9d7   :  { %1489 = vtanh.f32 %v608_v38 }
 0x9d8   :  { %1491 = vtanh.f32 %v607_v39 }
 0x9e1   :  { %v1490_v40 = vpop.eup %1489 }
 0x9e2   :  { %v1492_v41 = vpop.eup %1491  ;;  %617 = vrot.lane.b32.xlu1 %v1490_v40, %s1644_s4 }
 0x9e3   :  { %615 = vrot.lane.b32.xlu0 %v1492_v41, %s1644_s4 }
 0xa54   :  { %v618_v45 = vpop.permute.xlu1 %617 }
 0xa55   :  { %v622_v49 = vmul.f32 %v618_v45, %v612_v43  ;;  %v616_v50 = vpop.permute.xlu0 %615 }
 0xa56   :  { %v621_v52 = vmul.f32 %v616_v50, %v611_v46 }
 0xa57   :  { %v630_v53 = vadd.f32 %v628_v48, %v622_v49 }
 0xa58   :  { %v629_v54 = vadd.f32 %v627_v51, %v621_v52 }
 0xa59   :  { %v634_v55 = vrot.slane %v630_v53, 2  ;;  %v766_v24 = vrot.slane %v630_v53, 7 }
 0xa5a   :  { %v633_v56 = vrot.slane %v629_v54, 3  ;;  %v765_v26 = vrot.slane %v629_v54, 7 }
 0xa5c   :  { %v635_v57 = vsel %vm209_vm2, %v634_v55, %v633_v56 }
 0xa5d   :  { %636 = vrot.lane.b32.xlu0 %v635_v57, %s1644_s4 }
 0xacf   :  { %v637_v58 = vpop.permute.xlu0 %636 }
 0xad0   :  { %1349 = vmatmul.mubr.msk.f32.vlgmr.msra.gmra.mrb[4].mxu0 %vm75_vm0, %v637_v58 }
 0xad1   :  { %1424 = vmatpush3.bf16.msra.mxu0 %v1747_v32  ;;  %1370 = vmatprep.mubr.msk.f32.mxu0 %vm1642_vm1, %v1643_v34 }
 0xad2   :  { %1425 = vmatprep.subr.bf16.mxu0 %v1641_v31 }
 0xad5   :  { %1427 = vmatpush3.bf16.msra.mxu0 %v1755_v35 }
 0xba3   :  { %v706_v59 = vpop.f32.mrb[4].mxu0 }
 0xba4   :  { %v729_v60 = vadd.f32 %v706_v59, %v1776_v47  ;;  %v1350_v61 = vpop.f32.mrb[5].mxu0  ;;  %v711_v0 = vrot.slane %v706_v59, 4  ;;  %v712_v1 = vrot.slane %v706_v59, 5 }
 0xba6   :  { %v732_v62 = vrot.slane %v729_v60, 5  ;;  %v731_v63 = vrot.slane %v729_v60, 4  ;;  %v715_v2 = vadd.f32 %v711_v0, %v1735_v12  ;;  %v716_v3 = vadd.f32 %v712_v1, %v1733_v10 }
 0xba8   :  { %735 = vrot.lane.b32.xlu0 %v732_v62, %s1640_s6  ;;  %733 = vrot.lane.b32.xlu1 %v731_v63, %s1640_s6  ;;  %v1244_v4 = vmul.f32 -1.442695, %v715_v2  ;;  %v1245_v5 = vmul.f32 -1.442695, %v716_v3 }
 0xbaa   :  { %1493 = vpow2.f32 %v1244_v4 }
 0xbab   :  { %1495 = vpow2.f32 %v1245_v5 }
 0xbb4   :  { %v1494_v6 = vpop.eup %1493 }
 0xbb5   :  { %v1496_v7 = vpop.eup %1495  ;;  %v723_v8 = vadd.f32 1.0, %v1494_v6 }
 0xbb6   :  { %v724_v9 = vadd.f32 1.0, %v1496_v7 }
 0xbb7   :  { %1497 = vrcp.f32 %v723_v8 }
 0xbb8   :  { %1499 = vrcp.f32 %v724_v9 }
 0xbc1   :  { %v1498_v11 = vpop.eup %1497 }
 0xbc2   :  { %v1500_v13 = vpop.eup %1499  ;;  %v753_v28 = vsub.f32 1.0, %v1498_v11  ;;  %v769_v36 = vmul.f32 %v1498_v11, %v765_v26 }
 0xbc3   :  { %v754_v25 = vsub.f32 1.0, %v1500_v13  ;;  %v770_v29 = vmul.f32 %v1500_v13, %v766_v24 }
 0xc1a   :  { %v736_v14 = vpop.permute.xlu0 %735  ;;  %v734_v15 = vpop.permute.xlu1 %733 }
 0xc1b   :  { %v740_v16 = vmul.f32 %v1500_v13, %v736_v14  ;;  %v739_v17 = vmul.f32 %v1498_v11, %v734_v15 }
 0xc1d   :  { %745 = vrot.lane.b32.xlu0 %v740_v16, %s1640_s6  ;;  %743 = vrot.lane.b32.xlu1 %v739_v17, %s1640_s6 }
 0xc8f   :  { %v746_v18 = vpop.permute.xlu0 %745  ;;  %v744_v19 = vpop.permute.xlu1 %743 }
 0xc90   :  { %v750_v20 = vadd.f32 %v746_v18, %v1733_v10  ;;  %v749_v21 = vadd.f32 %v744_v19, %v1735_v12 }
 0xc92   :  { %1501 = vtanh.f32 %v750_v20 }
 0xc93   :  { %1503 = vtanh.f32 %v749_v21 }
 0xc9c   :  { %v1502_v22 = vpop.eup %1501 }
 0xc9d   :  { %v1504_v23 = vpop.eup %1503  ;;  %759 = vrot.lane.b32.xlu0 %v1502_v22, %s1644_s4 }
 0xc9e   :  { %757 = vrot.lane.b32.xlu1 %v1504_v23, %s1644_s4 }
 0xd0f   :  { %v760_v27 = vpop.permute.xlu0 %759 }
 0xd10   :  { %v764_v30 = vmul.f32 %v760_v27, %v754_v25  ;;  %v758_v33 = vpop.permute.xlu1 %757 }
 0xd11   :  { %v763_v37 = vmul.f32 %v758_v33, %v753_v28 }
 0xd12   :  { %v772_v38 = vadd.f32 %v770_v29, %v764_v30 }
 0xd13   :  { %v771_v39 = vadd.f32 %v769_v36, %v763_v37 }
 0xd14   :  { %v776_v40 = vrot.slane %v772_v38, 3  ;;  %v908_v4 = vrot.slane %v772_v38, 7 }
 0xd15   :  { %v775_v41 = vrot.slane %v771_v39, 4  ;;  %v907_v6 = vrot.slane %v771_v39, 7 }
 0xd17   :  { %v777_v42 = vsel %vm209_vm2, %v776_v40, %v775_v41 }
 0xd18   :  { %778 = vrot.lane.b32.xlu1 %v777_v42, %s1644_s4 }
 0xd8a   :  { %v779_v43 = vpop.permute.xlu1 %778 }
 0xd8b   :  { %1360 = vmatmul.mubr.msk.f32.vlgmr.msra.gmra.mrb[4].mxu1 %vm75_vm0, %v779_v43 }
 0xd8c   :  { %1430 = vmatpush3.bf16.msra.mxu1 %v1747_v32  ;;  %1381 = vmatprep.mubr.msk.f32.mxu1 %vm1642_vm1, %v1643_v34 }
 0xd8d   :  { %1431 = vmatprep.subr.bf16.mxu1 %v1641_v31 }
 0xd90   :  { %1433 = vmatpush3.bf16.msra.mxu1 %v1755_v35 }
 0xe5e   :  { %v848_v44 = vpop.f32.mrb[4].mxu1 }
 0xe5f   :  { %v871_v45 = vadd.f32 %v848_v44, %v1776_v47  ;;  %v1361_v46 = vpop.f32.mrb[5].mxu1  ;;  %v853_v50 = vrot.slane %v848_v44, 3  ;;  %v854_v51 = vrot.slane %v848_v44, 4 }
 0xe61   :  { %v874_v48 = vrot.slane %v871_v45, 4  ;;  %v873_v49 = vrot.slane %v871_v45, 3  ;;  %v857_v32 = vadd.f32 %v853_v50, %v1735_v12  ;;  %v858_v34 = vadd.f32 %v854_v51, %v1733_v10 }
 0xe63   :  { %877 = vrot.lane.b32.xlu1 %v874_v48, %s1640_s6  ;;  %875 = vrot.lane.b32.xlu0 %v873_v49, %s1640_s6  ;;  %v1247_v52 = vmul.f32 -1.442695, %v857_v32  ;;  %v1248_v31 = vmul.f32 -1.442695, %v858_v34 }
 0xe65   :  { %1505 = vpow2.f32 %v1247_v52 }
 0xe66   :  { %1507 = vpow2.f32 %v1248_v31 }
 0xe6f   :  { %v1506_v35 = vpop.eup %1505 }
 0xe70   :  { %v1508_v53 = vpop.eup %1507  ;;  %v865_v54 = vadd.f32 1.0, %v1506_v35 }
 0xe71   :  { %v866_v55 = vadd.f32 1.0, %v1508_v53 }
 0xe72   :  { %1509 = vrcp.f32 %v865_v54 }
 0xe73   :  { %1511 = vrcp.f32 %v866_v55 }
 0xe7c   :  { %v1510_v56 = vpop.eup %1509 }
 0xe7d   :  { %v1512_v57 = vpop.eup %1511  ;;  %v895_v8 = vsub.f32 1.0, %v1510_v56  ;;  %v911_v14 = vmul.f32 %v1510_v56, %v907_v6 }
 0xe7e   :  { %v896_v5 = vsub.f32 1.0, %v1512_v57  ;;  %v912_v9 = vmul.f32 %v1512_v57, %v908_v4 }
 0xed5   :  { %v878_v58 = vpop.permute.xlu1 %877  ;;  %v876_v59 = vpop.permute.xlu0 %875 }
 0xed6   :  { %v882_v60 = vmul.f32 %v1512_v57, %v878_v58  ;;  %v881_v61 = vmul.f32 %v1510_v56, %v876_v59 }
 0xed8   :  { %887 = vrot.lane.b32.xlu1 %v882_v60, %s1640_s6  ;;  %885 = vrot.lane.b32.xlu0 %v881_v61, %s1640_s6 }
 0xf4a   :  { %v888_v62 = vpop.permute.xlu1 %887  ;;  %v886_v63 = vpop.permute.xlu0 %885 }
 0xf4b   :  { %v892_v0 = vadd.f32 %v888_v62, %v1733_v10  ;;  %v891_v1 = vadd.f32 %v886_v63, %v1735_v12 }
 0xf4d   :  { %1513 = vtanh.f32 %v892_v0 }
 0xf4e   :  { %1515 = vtanh.f32 %v891_v1 }
 0xf57   :  { %v1514_v2 = vpop.eup %1513 }
 0xf58   :  { %v1516_v3 = vpop.eup %1515  ;;  %901 = vrot.lane.b32.xlu1 %v1514_v2, %s1644_s4 }
 0xf59   :  { %899 = vrot.lane.b32.xlu0 %v1516_v3, %s1644_s4 }
 0xfca   :  { %v902_v7 = vpop.permute.xlu1 %901 }
 0xfcb   :  { %v906_v11 = vmul.f32 %v902_v7, %v896_v5  ;;  %v900_v13 = vpop.permute.xlu0 %899 }
 0xfcc   :  { %v905_v15 = vmul.f32 %v900_v13, %v895_v8 }
 0xfcd   :  { %v914_v16 = vadd.f32 %v912_v9, %v906_v11 }
 0xfce   :  { %v913_v17 = vadd.f32 %v911_v14, %v905_v15 }
 0xfcf   :  { %v918_v18 = vrot.slane %v914_v16, 4  ;;  %v1050_v52 = vrot.slane %v914_v16, 7 }
 0xfd0   :  { %v917_v19 = vrot.slane %v913_v17, 5  ;;  %v1049_v35 = vrot.slane %v913_v17, 7 }
 0xfd2   :  { %v919_v20 = vsel %vm209_vm2, %v918_v18, %v917_v19 }
 0xfd3   :  { %920 = vrot.lane.b32.xlu0 %v919_v20, %s1644_s4 }
0x1045   :  { %v921_v21 = vpop.permute.xlu0 %920 }
0x1046   :  { %1371 = vmatmul.mubr.msk.f32.vlgmr.msra.gmra.mrb[6].mxu0 %vm75_vm0, %v921_v21 }
0x1119   :  { %v990_v22 = vpop.f32.mrb[6].mxu0 }
0x111a   :  { %v1013_v23 = vadd.f32 %v990_v22, %v1776_v47  ;;  %v1372_v24 = vpop.f32.mrb[7].mxu0  ;;  %v995_v27 = vrot.slane %v990_v22, 2  ;;  %v996_v28 = vrot.slane %v990_v22, 3 }
0x111c   :  { %v1016_v25 = vrot.slane %v1013_v23, 3  ;;  %v1015_v26 = vrot.slane %v1013_v23, 2  ;;  %v999_v29 = vadd.f32 %v995_v27, %v1735_v12  ;;  %v1000_v30 = vadd.f32 %v996_v28, %v1733_v10 }
0x111e   :  { %1019 = vrot.lane.b32.xlu0 %v1016_v25, %s1640_s6  ;;  %1017 = vrot.lane.b32.xlu1 %v1015_v26, %s1640_s6  ;;  %v1250_v33 = vmul.f32 -1.442695, %v999_v29  ;;  %v1251_v36 = vmul.f32 -1.442695, %v1000_v30 }
0x1120   :  { %1517 = vpow2.f32 %v1250_v33 }
0x1121   :  { %1519 = vpow2.f32 %v1251_v36 }
0x112a   :  { %v1518_v37 = vpop.eup %1517 }
0x112b   :  { %v1520_v38 = vpop.eup %1519  ;;  %v1007_v39 = vadd.f32 1.0, %v1518_v37 }
0x112c   :  { %v1008_v40 = vadd.f32 1.0, %v1520_v38 }
0x112d   :  { %1521 = vrcp.f32 %v1007_v39 }
0x112e   :  { %1523 = vrcp.f32 %v1008_v40 }
0x1137   :  { %v1522_v41 = vpop.eup %1521 }
0x1138   :  { %v1524_v42 = vpop.eup %1523  ;;  %v1037_v54 = vsub.f32 1.0, %v1522_v41  ;;  %v1053_v58 = vmul.f32 %v1522_v41, %v1049_v35 }
0x1139   :  { %v1038_v31 = vsub.f32 1.0, %v1524_v42  ;;  %v1054_v55 = vmul.f32 %v1524_v42, %v1050_v52 }
0x1190   :  { %v1020_v43 = vpop.permute.xlu0 %1019  ;;  %v1018_v44 = vpop.permute.xlu1 %1017 }
0x1191   :  { %v1024_v45 = vmul.f32 %v1524_v42, %v1020_v43  ;;  %v1023_v46 = vmul.f32 %v1522_v41, %v1018_v44 }
0x1193   :  { %1029 = vrot.lane.b32.xlu0 %v1024_v45, %s1640_s6  ;;  %1027 = vrot.lane.b32.xlu1 %v1023_v46, %s1640_s6 }
0x1205   :  { %v1030_v48 = vpop.permute.xlu0 %1029  ;;  %v1028_v49 = vpop.permute.xlu1 %1027 }
0x1206   :  { %v1034_v50 = vadd.f32 %v1030_v48, %v1733_v10  ;;  %v1033_v51 = vadd.f32 %v1028_v49, %v1735_v12 }
0x1208   :  { %1525 = vtanh.f32 %v1034_v50 }
0x1209   :  { %1527 = vtanh.f32 %v1033_v51 }
0x1212   :  { %v1526_v32 = vpop.eup %1525 }
0x1213   :  { %v1528_v34 = vpop.eup %1527  ;;  %1043 = vrot.lane.b32.xlu0 %v1526_v32, %s1644_s4 }
0x1214   :  { %1041 = vrot.lane.b32.xlu1 %v1528_v34, %s1644_s4 }
0x1285   :  { %v1044_v53 = vpop.permute.xlu0 %1043 }
0x1286   :  { %v1048_v56 = vmul.f32 %v1044_v53, %v1038_v31  ;;  %v1042_v57 = vpop.permute.xlu1 %1041 }
0x1287   :  { %v1047_v59 = vmul.f32 %v1042_v57, %v1037_v54 }
0x1288   :  { %v1056_v60 = vadd.f32 %v1054_v55, %v1048_v56 }
0x1289   :  { %v1055_v61 = vadd.f32 %v1053_v58, %v1047_v59 }
0x128a   :  { %v1060_v62 = vrot.slane %v1056_v60, 5  ;;  %v1192_v30 = vrot.slane %v1056_v60, 7 }
0x128b   :  { %v1059_v63 = vrot.slane %v1055_v61, 6  ;;  %v1191_v36 = vrot.slane %v1055_v61, 7 }
0x128d   :  { %v1061_v0 = vsel %vm209_vm2, %v1060_v62, %v1059_v63 }
0x128e   :  { %1062 = vrot.lane.b32.xlu1 %v1061_v0, %s1644_s4 }
0x1300   :  { %v1063_v1 = vpop.permute.xlu1 %1062 }
0x1301   :  { %1382 = vmatmul.mubr.msk.f32.vlgmr.msra.gmra.mrb[6].mxu1 %vm75_vm0, %v1063_v1 }
0x13d4   :  { %v1132_v2 = vpop.f32.mrb[6].mxu1 }
0x13d5   :  { %v1155_v3 = vadd.f32 %v1132_v2, %v1776_v47  ;;  %v1383_v4 = vpop.f32.mrb[7].mxu1  ;;  %v1137_v7 = vrot.slane %v1132_v2, 1  ;;  %v1138_v8 = vrot.slane %v1132_v2, 2 }
0x13d7   :  { %v1158_v5 = vrot.slane %v1155_v3, 2  ;;  %v1157_v6 = vrot.slane %v1155_v3, 1  ;;  %v1141_v9 = vadd.f32 %v1137_v7, %v1735_v12  ;;  %v1142_v11 = vadd.f32 %v1138_v8, %v1733_v10 }
0x13d9   :  { %1161 = vrot.lane.b32.xlu0 %v1158_v5, %s1640_s6  ;;  %1159 = vrot.lane.b32.xlu1 %v1157_v6, %s1640_s6  ;;  %v1253_v13 = vmul.f32 -1.442695, %v1141_v9  ;;  %v1254_v14 = vmul.f32 -1.442695, %v1142_v11 }
0x13db   :  { %1529 = vpow2.f32 %v1253_v13 }
0x13dc   :  { %1531 = vpow2.f32 %v1254_v14 }
0x13e5   :  { %v1530_v15 = vpop.eup %1529 }
0x13e6   :  { %v1532_v16 = vpop.eup %1531  ;;  %v1149_v47 = vadd.f32 1.0, %v1530_v15 }
0x13e7   :  { %v1150_v17 = vadd.f32 1.0, %v1532_v16 }
0x13e8   :  { %1533 = vrcp.f32 %v1149_v47 }
0x13e9   :  { %1535 = vrcp.f32 %v1150_v17 }
0x13f2   :  { %v1534_v18 = vpop.eup %1533 }
0x13f3   :  { %v1536_v19 = vpop.eup %1535  ;;  %v1179_v38 = vsub.f32 1.0, %v1534_v18  ;;  %v1195_v42 = vmul.f32 %v1534_v18, %v1191_v36 }
0x13f4   :  { %v1180_v33 = vsub.f32 1.0, %v1536_v19  ;;  %v1196_v39 = vmul.f32 %v1536_v19, %v1192_v30 }
0x144b   :  { %v1162_v20 = vpop.permute.xlu0 %1161  ;;  %v1160_v21 = vpop.permute.xlu1 %1159 }
0x144c   :  { %v1166_v22 = vmul.f32 %v1536_v19, %v1162_v20  ;;  %v1165_v23 = vmul.f32 %v1534_v18, %v1160_v21 }
0x144e   :  { %1171 = vrot.lane.b32.xlu0 %v1166_v22, %s1640_s6  ;;  %1169 = vrot.lane.b32.xlu1 %v1165_v23, %s1640_s6 }
0x14c0   :  { %v1172_v24 = vpop.permute.xlu0 %1171  ;;  %v1170_v25 = vpop.permute.xlu1 %1169 }
0x14c1   :  { %v1176_v26 = vadd.f32 %v1172_v24, %v1733_v10  ;;  %v1175_v27 = vadd.f32 %v1170_v25, %v1735_v12 }
0x14c3   :  { %1537 = vtanh.f32 %v1176_v26 }
0x14c4   :  { %1539 = vtanh.f32 %v1175_v27 }
0x14cd   :  { %v1538_v28 = vpop.eup %1537 }
0x14ce   :  { %v1540_v29 = vpop.eup %1539  ;;  %1185 = vrot.lane.b32.xlu0 %v1538_v28, %s1644_s4 }
0x14cf   :  { %1183 = vrot.lane.b32.xlu1 %v1540_v29, %s1644_s4 }
0x1540   :  { %v1186_v37 = vpop.permute.xlu0 %1185 }
0x1541   :  { %v1190_v40 = vmul.f32 %v1186_v37, %v1180_v33  ;;  %v1184_v41 = vpop.permute.xlu1 %1183 }
0x1542   :  { %v1189_v10 = vmul.f32 %v1184_v41, %v1179_v38 }
0x1543   :  { %v1198_v43 = vadd.f32 %v1196_v39, %v1190_v40 }
0x1544   :  { %v1197_v12 = vadd.f32 %v1195_v42, %v1189_v10 }
0x1545   :  { %v1201_v44 = vrot.slane %v1198_v43, 7 }
0x1546   :  { %1202 = vrot.lane.b32.xlu0 %v1197_v12, %s1644_s4 }
0x1547   :  { %1204 = vrot.lane.b32.xlu1 %v1201_v44, %s1644_s4 }
0x15b8   :  { %v1203_v45 = vpop.permute.xlu0 %1202 }
0x15b9   :  { %1209 = vst.msk [vmem:[#allocation8 - $0x7] sm:$0x80] %vm1208_vm3, %v1203_v45  ;;  %v1205_v46 = vpop.permute.xlu1 %1204 }
0x15ba   :  { %1211 = vst.msk [vmem:[#allocation8 + $0x1] sm:$0x1] %vm1210_vm4, %v1205_v46 }
0x15bb   :  { %1618 = shalt.err (!%p1615_p0)
}
0x15bc   :  { %s1619_s12 = scalar_lea.hbm %s1914_s5, 32 }
0x15bd   :  { %p1620_p1 = scmp.ne.s32.totalorder %s1914_s5, %s1619_s12  ;;  %p1623_p2 = scmp.lt.u32.totalorder %s1619_s12, %s1914_s5 }
0x15bf   :  { %p1625_p3 = pnand %p1623_p2, %p1620_p1 }
0x15c1   :  { %1628 = shalt.err (!%p1625_p3)
}
0x15c2   :  { %1221 = dma.vmem_to_hbm [thread:$0]  %s1219_s8, 32, %s1914_s5, [#allocation4]  }
0x15c3   :  { %1633 = dma.done.wait [#allocation4], 32  }
0x15c4   :  { %1634 = vsyncadd [#allocation4], 4294967264 }
0x15c5   :  { %1225 = vsyncpa [#allocation3], 1 }
0x15c6   :  { %1226 = vsyncpa [#allocation6], 1 }
0x15c7   :  { %1227 = vsyncpa [#allocation4], 1 }

</bundles_post_ra>
